<compile_context>
chip_gen: v5e
topology: v5e:2x2
jax: 0.10.0
libtpu: 0.0.40
codegen_flags: <defaults>
</compile_context>

<pallas_src>
import functools

import jax
import jax.numpy as jnp
from jax.experimental import pallas as pl
from jax.experimental.pallas import tpu as pltpu


# --------------------------------------------------------------------------- #
# Small helpers
# --------------------------------------------------------------------------- #
def _round_up(x, m):
    return ((x + m - 1) // m) * m


def _pad_rows(a, rows):
    """Pad axis 0 of a 2-D array up to `rows` with zeros (sublane padding)."""
    pad = rows - a.shape[0]
    if pad <= 0:
        return a
    return jnp.concatenate([a, jnp.zeros((pad,) + a.shape[1:], a.dtype)], axis=0)


def _fold_factor(H, W):
    """Smallest k dividing H such that k*W is a multiple of 128 (else 1)."""
    if W % 128 == 0:
        return 1
    for k in range(2, H + 1):
        if H % k == 0 and (k * W) % 128 == 0:
            return k
    return 1


def _vmem_capacity_bytes():
    """Physical VMEM per TensorCore (falls back to 128 MiB if unknown)."""
    try:
        cap = int(pltpu.get_tpu_info().vmem_capacity_bytes)
        if cap > 0:
            return cap
    except Exception:
        pass
    return 128 * 1024 * 1024


def _num_tensorcores():
    """TensorCores that share the grid's 'parallel' axes (v7x / v4: 2)."""
    try:
        kind = jax.devices()[0].device_kind.lower()
    except Exception:
        return 1
    return 2 if ("v7" in kind or "7x" in kind or "v4" in kind) else 1


def _choose_tile(Hf, footprint, budget, *, align_req, align_pref, prefer_even,
                 max_rows=None):
    """Largest H-tile (divisor of Hf) whose in-flight footprint fits `budget`.

    Preference: 32-aligned tiles (enable int8 target streaming) over the
    minimum dtype alignment, and (on 2-TC chips) even tile counts so both
    cores get equal work.  If nothing fits, the smallest aligned divisor is
    returned and the caller raises vmem_limit_bytes to cover it.
    """
    cap = Hf if max_rows is None else max(1, min(int(max_rows), Hf))
    divisors = [d for d in range(1, Hf + 1) if Hf % d == 0]

    def aligned(d, a):
        return d == Hf or d % a == 0

    for align in (align_pref, align_req):
        cands = [d for d in divisors
                 if d <= cap and aligned(d, align) and footprint(d) <= budget]
        if not cands:
            continue
        if prefer_even:
            even = [d for d in cands if (Hf // d) % 2 == 0]
            if even:
                return max(even)
        return max(cands)

    # Nothing fits the budget / row cap: minimize the footprint instead.
    return min(d for d in divisors if aligned(d, align_req))


# --------------------------------------------------------------------------- #
# Kernel
# --------------------------------------------------------------------------- #
def _dice_partials_kernel(x_ref, t_ref, inter_ref, sump_ref, sumt_ref,
                          *, cmp_dtype, mask_dtype):
    B, C, _, _ = x_ref.shape
    Mp = inter_ref.shape[1]
    Bp = sump_ref.shape[1]
    Cp = sumt_ref.shape[1]

    # Zero the VMEM-resident accumulators at the first reduction step.
    @pl.when(pl.program_id(1) == 0)
    def _():
        inter_ref[...] = jnp.zeros(inter_ref.shape, inter_ref.dtype)
        sump_ref[...] = jnp.zeros(sump_ref.shape, sump_ref.dtype)
        sumt_ref[...] = jnp.zeros(sumt_ref.shape, sumt_ref.dtype)

    # ---- P[b,h,w] = sum_c probas[b,c,h,w] ---------------------------------
    # Upcast one (B, tH, Wf) class slab at a time: no (B, C, tH, Wf) f32
    # temporary is ever materialized (bf16 inputs stay packed in the block).
    P = x_ref[:, 0].astype(jnp.float32)
    for c in range(1, C):
        P = P + x_ref[:, c].astype(jnp.float32)

    sump_ref[...] += _pad_rows(jnp.sum(P, axis=1), Bp)[None]

    # ---- one-hot counts, one class at a time ------------------------------
    # T_c[h,w] = sum_b 1{targets[b,h,w] == c}; reduced over the tile rows
    # immediately, so neither a (C, tH, Wf) temporary nor an iota is built.
    # Counts are exact in bf16 (labels < 256, counts <= B), accumulators f32.
    t = t_ref[:, 0]
    if t.dtype != cmp_dtype:
        t = t.astype(cmp_dtype)

    sumt_rows = []
    inter_rows = []
    for c in range(C):
        mask = (t == c).astype(mask_dtype)                     # (B, tH, Wf)
        tc = jnp.sum(mask, axis=0).astype(jnp.float32)         # (tH, Wf), exact
        sumt_rows.append(jnp.sum(tc, axis=0, keepdims=True))   # (1, Wf)
        if C > 1:
            pm = P[c] if B > 1 else P[0]                       # (tH, Wf)
            inter_rows.append(jnp.sum(pm * tc, axis=0, keepdims=True))
        else:
            inter_rows.append(jnp.sum(P * tc[None], axis=1))   # (B, Wf)

    sumt_ref[...] += _pad_rows(jnp.concatenate(sumt_rows, axis=0), Cp)[None]
    inter_ref[...] += _pad_rows(jnp.concatenate(inter_rows, axis=0), Mp)[None]


# --------------------------------------------------------------------------- #
# Wrapper
# --------------------------------------------------------------------------- #
def dice_loss(inputs, targets, *, max_tile_rows=None, onehot_dtype=None):
    """Pallas TPU DiceLoss. inputs: [B,C,H,W] float, targets: [B,1,H,W] int."""
    if inputs.ndim != 4:
        raise ValueError("inputs must have shape [B, C, H, W]")
    if targets.ndim != 4 or targets.shape[1] != 1:
        raise ValueError("targets must have shape [B, 1, H, W]")
    B, C, H, W = inputs.shape
    if not (B == C or B == 1 or C == 1):
        # The original module's right-aligned broadcast is only valid here.
        raise ValueError("DiceLoss broadcast requires B == C or one of them 1")
    M = max(B, C)
    Mp, Bp, Cp = _round_up(M, 8), _round_up(B, 8), _round_up(C, 8)

    in_dt = jnp.dtype(inputs.dtype)
    in_sz = in_dt.itemsize

    # --- fold rows into lanes / pad lanes so the minor dim is 128-dense -----
    k = _fold_factor(H, W)
    Hf, Wraw = H // k, W * k
    Wf = _round_up(Wraw, 128)
    pad_w = Wf - Wraw

    x = inputs.reshape(B, C, Hf, Wraw)
    t = targets.astype(jnp.int32).reshape(B, 1, Hf, Wraw)
    if pad_w:
        x = jnp.pad(x, ((0, 0), (0, 0), (0, 0), (0, pad_w)))
        t = jnp.pad(t, ((0, 0), (0, 0), (0, 0), (0, pad_w)), constant_values=-1)

    # --- per-generation sizing ----------------------------------------------
    vmem_cap = _vmem_capacity_bytes()
    n_tc = _num_tensorcores()
    budget = min(vmem_cap // 2, 32 * 1024 * 1024)

    def footprint(th):
        inp = 2 * B * C * th * Wf * in_sz        # double-buffered probas blocks
        tgt = 2 * B * th * Wf * 4                # double-buffered target blocks
        tmp = (3 * B + 2) * th * Wf * 4          # P + slab upcast + masks + tc
        acc = 4 * (Mp + Bp + Cp) * Wf * 4        # resident accumulators + locals
        return inp + tgt + tmp + acc

    align_req = 16 if in_sz == 2 else 8
    tH = _choose_tile(Hf, footprint, budget, align_req=align_req, align_pref=32,
                      prefer_even=(n_tc >= 2), max_rows=max_tile_rows)
    n_tiles = Hf // tH
    n_par = 2 if (n_tc >= 2 and n_tiles >= 2 and n_tiles % 2 == 0) else 1
    inner = n_tiles // n_par

    fp = footprint(tH)
    vmem_limit = max(32 << 20, (fp * 3) // 2 + (8 << 20))
    vmem_limit = int(min(vmem_limit, (vmem_cap * 9) // 10))

    # --- dtype of the one-hot path / target HBM stream ----------------------
    if onehot_dtype is None:
        bf16_onehot = (in_dt == jnp.bfloat16) and B <= 256 and C <= 256
    else:
        bf16_onehot = jnp.dtype(onehot_dtype) == jnp.bfloat16
    if bf16_onehot and (tH % 16 == 0 or tH == Hf):
        tgt_dtype, cmp_dtype, mask_dtype = jnp.bfloat16, jnp.bfloat16, jnp.bfloat16
    elif C <= 127 and tH % 32 == 0:
        tgt_dtype, cmp_dtype, mask_dtype = jnp.int8, jnp.int32, jnp.float32
    else:
        tgt_dtype, cmp_dtype, mask_dtype = jnp.int32, jnp.int32, jnp.float32
    t = t.astype(tgt_dtype)

    def tile_idx(p, h):
        return (0, 0, p * inner + h, 0)

    def acc_idx(p, h):
        return (p, 0, 0)

    kernel = functools.partial(_dice_partials_kernel,
                               cmp_dtype=cmp_dtype, mask_dtype=mask_dtype)

    out_shape = (
        jax.ShapeDtypeStruct((n_par, Mp, Wf), jnp.float32),   # intersection
        jax.ShapeDtypeStruct((n_par, Bp, Wf), jnp.float32),   # sum_h sum_c probas
        jax.ShapeDtypeStruct((n_par, Cp, Wf), jnp.float32),   # sum_h sum_b onehot
    )

    inter_p, sump_p, sumt_p = pl.pallas_call(
        kernel,
        grid=(n_par, inner),
        in_specs=[
            # NOTE: default double buffering is enough once the large
            # in-kernel temporaries are gone; deeper pipelining not needed.
            pl.BlockSpec((B, C, tH, Wf), tile_idx),
            pl.BlockSpec((B, 1, tH, Wf), tile_idx),
        ],
        out_specs=(
            pl.BlockSpec((1, Mp, Wf), acc_idx),
            pl.BlockSpec((1, Bp, Wf), acc_idx),
            pl.BlockSpec((1, Cp, Wf), acc_idx),
        ),
        out_shape=out_shape,
        compiler_params=pltpu.CompilerParams(
            dimension_semantics=("parallel", "arbitrary"),
            vmem_limit_bytes=vmem_limit),
        cost_estimate=pl.CostEstimate(
            flops=5 * B * C * H * W,
            transcendentals=0,
            bytes_accessed=int(x.size) * in_sz
                           + int(t.size) * jnp.dtype(tgt_dtype).itemsize
                           + n_par * (Mp + Bp + Cp) * Wf * 4),
    )(x, t)

    # --- tiny O(C*W) finalize: the epsilon ratio & mean applied exactly once.
    inter = inter_p.sum(axis=0)[:M, :Wraw].reshape(M, k, W).sum(axis=1)   # (M, W)
    sumP = sump_p.sum(axis=0)[:B, :Wraw].reshape(B, k, W).sum(axis=1)     # (B, W)
    sumT = sumt_p.sum(axis=0)[:C, :Wraw].reshape(C, k, W).sum(axis=1)     # (C, W)
    card = float(B) * sumP + float(C) * sumT                              # (M, W)
    dice = jnp.mean((2.0 * inter + 1e-07) / (card + 1e-07))
    return (1.0 - dice).astype(jnp.float32)


# --------------------------------------------------------------------------- #
# Reference (literal JAX translation of the PyTorch forward) — verification.
# --------------------------------------------------------------------------- #
def dice_loss_ref(inputs, targets):
    num_classes = inputs.shape[1]
    true_1_hot = jnp.eye(num_classes, dtype=jnp.float32)[targets]        # (B,1,H,W,C)
    true_1_hot = jnp.transpose(true_1_hot, (0, 4, 1, 2, 3))              # (B,C,1,H,W)
    probas = inputs.astype(jnp.float32)
    dims = (0,) + tuple(range(2, targets.ndim))                          # (0, 2, 3)
    intersection = jnp.sum(probas * true_1_hot, axis=dims)
    cardinality = jnp.sum(probas + true_1_hot, axis=dims)
    dice = jnp.mean((2.0 * intersection + 1e-07) / (cardinality + 1e-07))
    return 1.0 - dice


if __name__ == "__main__":
    key = jax.random.PRNGKey(0)

    def make_case(k, B, C, H, W, dtype=jnp.float32):
        k1, k2 = jax.random.split(k)
        logits = jax.random.normal(k1, (B, C, H, W), jnp.float32)
        probas = jax.nn.softmax(logits, axis=1).astype(dtype)
        tgt = jax.random.randint(k2, (B, 1, H, W), 0, C, dtype=jnp.int32)
        return probas, tgt

    def check(name, probas, tgt, atol, rtol, **kw):
        out = jax.block_until_ready(dice_loss(probas, tgt, **kw))
        ref = jax.block_until_ready(dice_loss_ref(probas, tgt))
        assert jnp.allclose(out, ref, atol=atol, rtol=rtol), \
            (name, float(out), float(ref))

    keys = jax.random.split(key, 5)

    # 1) Small shape, lane folding (W=16 -> Wf=128), single-tile path.
    check("fold_small_f32", *make_case(keys[0], 4, 4, 16, 16), 2e-5, 2e-4)

    # 2) Multi-tile streaming accumulation + int8 target streaming
    #    (32-row tiles forced so several "arbitrary" grid steps run).
    check("tiled_f32_int8_targets", *make_case(keys[1], 4, 4, 256, 128),
          2e-5, 2e-4, max_tile_rows=32)

    # 3) bf16 probas: per-slab upcast, bf16 one-hot path, bf16 target stream.
    check("tiled_bf16", *make_case(keys[2], 4, 4, 128, 128, jnp.bfloat16),
          1e-4, 1e-3, max_tile_rows=32)

    # 4) The module's B == 1 right-aligned broadcast special case.
    check("broadcast_b1", *make_case(keys[3], 1, 4, 32, 64), 2e-5, 2e-4)

    # 5) W that cannot be folded to a multiple of 128 -> lane padding path.
    check("lane_pad", *make_case(keys[4], 2, 2, 15, 20), 2e-5, 2e-4)

    print("KERNEL_OK")
</pallas_src>

<mosaic_0001>
module attributes {stable_mosaic.version = 11 : i64} {
  func.func @_dice_partials_kernel(%arg0: i32, %arg1: i32, %arg2: memref<4x4x2x128xf32, #tpu.memory_space<vmem>>, %arg3: memref<4x1x2x128xi32, #tpu.memory_space<vmem>>, %arg4: memref<1x8x128xf32, #tpu.memory_space<vmem>>, %arg5: memref<1x8x128xf32, #tpu.memory_space<vmem>>, %arg6: memref<1x8x128xf32, #tpu.memory_space<vmem>>) attributes {dimension_semantics = [#tpu.dimension_semantics<parallel>, #tpu.dimension_semantics<arbitrary>], iteration_bounds = array<i64: 1, 1>, scalar_prefetch = 0 : i64, scratch_operands = 0 : i64, tpu.core_type = #tpu.core_type<tc>, window_params = [{transform_indices = @transform_0, window_bounds = array<i64: 4, 4, 2, 128>}, {transform_indices = @transform_1, window_bounds = array<i64: 4, 1, 2, 128>}, {transform_indices = @transform_2, window_bounds = array<i64: 1, 8, 128>}, {transform_indices = @transform_3, window_bounds = array<i64: 1, 8, 128>}, {transform_indices = @transform_4, window_bounds = array<i64: 1, 8, 128>}]} {
    %c0_i32 = arith.constant 0 : i32
    %0 = arith.cmpi eq, %arg1, %c0_i32 : i32
    %1 = arith.extui %0 : i1 to i32
    %c0_i32_0 = arith.constant 0 : i32
    %2 = arith.cmpi ne, %1, %c0_i32_0 : i32
    scf.if %2 {
      %cst_51 = arith.constant 0.000000e+00 : f32
      %85 = vector.broadcast %cst_51 : f32 to vector<1x8x128xf32>
      %c0_52 = arith.constant 0 : index
      %c0_53 = arith.constant 0 : index
      %c0_54 = arith.constant 0 : index
      %86 = vector.load %arg4[%c0_52, %c0_53, %c0_54] : memref<1x8x128xf32, #tpu.memory_space<vmem>>, vector<1x8x128xf32>
      tpu.vector_store %arg4[%c0_52, %c0_53, %c0_54], %85 {strides = array<i32>} : memref<1x8x128xf32, #tpu.memory_space<vmem>>, vector<1x8x128xf32>,
      %cst_55 = arith.constant 0.000000e+00 : f32
      %87 = vector.broadcast %cst_55 : f32 to vector<1x8x128xf32>
      %c0_56 = arith.constant 0 : index
      %c0_57 = arith.constant 0 : index
      %c0_58 = arith.constant 0 : index
      %88 = vector.load %arg5[%c0_56, %c0_57, %c0_58] : memref<1x8x128xf32, #tpu.memory_space<vmem>>, vector<1x8x128xf32>
      tpu.vector_store %arg5[%c0_56, %c0_57, %c0_58], %87 {strides = array<i32>} : memref<1x8x128xf32, #tpu.memory_space<vmem>>, vector<1x8x128xf32>,
      %cst_59 = arith.constant 0.000000e+00 : f32
      %89 = vector.broadcast %cst_59 : f32 to vector<1x8x128xf32>
      %c0_60 = arith.constant 0 : index
      %c0_61 = arith.constant 0 : index
      %c0_62 = arith.constant 0 : index
      %90 = vector.load %arg6[%c0_60, %c0_61, %c0_62] : memref<1x8x128xf32, #tpu.memory_space<vmem>>, vector<1x8x128xf32>
      tpu.vector_store %arg6[%c0_60, %c0_61, %c0_62], %89 {strides = array<i32>} : memref<1x8x128xf32, #tpu.memory_space<vmem>>, vector<1x8x128xf32>,
    } else {
    }
    %c0 = arith.constant 0 : index
    %c0_1 = arith.constant 0 : index
    %c0_2 = arith.constant 0 : index
    %c0_3 = arith.constant 0 : index
    %3 = vector.load %arg2[%c0, %c0_1, %c0_2, %c0_3] : memref<4x4x2x128xf32, #tpu.memory_space<vmem>>, vector<4x1x2x128xf32>
    %4 = vector.shape_cast %3 : vector<4x1x2x128xf32> to vector<4x2x128xf32>
    %c0_4 = arith.constant 0 : index
    %c1 = arith.constant 1 : index
    %c0_5 = arith.constant 0 : index
    %c0_6 = arith.constant 0 : index
    %5 = vector.load %arg2[%c0_4, %c1, %c0_5, %c0_6] : memref<4x4x2x128xf32, #tpu.memory_space<vmem>>, vector<4x1x2x128xf32>
    %6 = vector.shape_cast %5 : vector<4x1x2x128xf32> to vector<4x2x128xf32>
    %7 = arith.addf %4, %6 : vector<4x2x128xf32>
    %c0_7 = arith.constant 0 : index
    %c2 = arith.constant 2 : index
    %c0_8 = arith.constant 0 : index
    %c0_9 = arith.constant 0 : index
    %8 = vector.load %arg2[%c0_7, %c2, %c0_8, %c0_9] : memref<4x4x2x128xf32, #tpu.memory_space<vmem>>, vector<4x1x2x128xf32>
    %9 = vector.shape_cast %8 : vector<4x1x2x128xf32> to vector<4x2x128xf32>
    %10 = arith.addf %7, %9 : vector<4x2x128xf32>
    %c0_10 = arith.constant 0 : index
    %c3 = arith.constant 3 : index
    %c0_11 = arith.constant 0 : index
    %c0_12 = arith.constant 0 : index
    %11 = vector.load %arg2[%c0_10, %c3, %c0_11, %c0_12] : memref<4x4x2x128xf32, #tpu.memory_space<vmem>>, vector<4x1x2x128xf32>
    %12 = vector.shape_cast %11 : vector<4x1x2x128xf32> to vector<4x2x128xf32>
    %13 = arith.addf %10, %12 : vector<4x2x128xf32>
    %c0_13 = arith.constant 0 : index
    %c0_14 = arith.constant 0 : index
    %c0_15 = arith.constant 0 : index
    %14 = vector.load %arg5[%c0_13, %c0_14, %c0_15] : memref<1x8x128xf32, #tpu.memory_space<vmem>>, vector<1x8x128xf32>
    %cst = arith.constant dense<0.000000e+00> : vector<4x128xf32>
    %15 = vector.multi_reduction <add>, %13, %cst [1] : vector<4x2x128xf32> to vector<4x128xf32>
    %cst_16 = arith.constant 0.000000e+00 : f32
    %16 = vector.broadcast %cst_16 : f32 to vector<4x128xf32>
    %17 = tpu.concatenate %15, %16 in 0 : vector<4x128xf32>, vector<4x128xf32> -> vector<8x128xf32>
    %18 = vector.shape_cast %17 : vector<8x128xf32> to vector<1x8x128xf32>
    %19 = arith.addf %14, %18 : vector<1x8x128xf32>
    %c0_17 = arith.constant 0 : index
    %c0_18 = arith.constant 0 : index
    %c0_19 = arith.constant 0 : index
    %20 = vector.load %arg5[%c0_17, %c0_18, %c0_19] : memref<1x8x128xf32, #tpu.memory_space<vmem>>, vector<1x8x128xf32>
    tpu.vector_store %arg5[%c0_17, %c0_18, %c0_19], %19 {strides = array<i32>} : memref<1x8x128xf32, #tpu.memory_space<vmem>>, vector<1x8x128xf32>,
    %c0_20 = arith.constant 0 : index
    %c0_21 = arith.constant 0 : index
    %c0_22 = arith.constant 0 : index
    %c0_23 = arith.constant 0 : index
    %21 = vector.load %arg3[%c0_20, %c0_21, %c0_22, %c0_23] : memref<4x1x2x128xi32, #tpu.memory_space<vmem>>, vector<4x1x2x128xi32>
    %22 = vector.shape_cast %21 : vector<4x1x2x128xi32> to vector<4x2x128xi32>
    %c0_i32_24 = arith.constant 0 : i32
    %23 = vector.broadcast %c0_i32_24 : i32 to vector<4x2x128xi32>
    %24 = arith.cmpi eq, %22, %23 : vector<4x2x128xi32>
    %25 = arith.extui %24 : vector<4x2x128xi1> to vector<4x2x128xi32>
    %26 = arith.sitofp %25 : vector<4x2x128xi32> to vector<4x2x128xf32>
    %cst_25 = arith.constant dense<0.000000e+00> : vector<2x128xf32>
    %27 = vector.multi_reduction <add>, %26, %cst_25 [0] : vector<4x2x128xf32> to vector<2x128xf32>
    %cst_26 = arith.constant dense<0.000000e+00> : vector<128xf32>
    %28 = vector.multi_reduction <add>, %27, %cst_26 [0] : vector<2x128xf32> to vector<128xf32>
    %29 = vector.shape_cast %28 : vector<128xf32> to vector<1x128xf32>
    %30 = vector.extract_strided_slice %13 {offsets = [0, 0, 0], sizes = [1, 2, 128], strides = [1, 1, 1]} : vector<4x2x128xf32> to vector<1x2x128xf32>
    %31 = vector.shape_cast %30 : vector<1x2x128xf32> to vector<2x128xf32>
    %32 = arith.mulf %31, %27 : vector<2x128xf32>
    %cst_27 = arith.constant dense<0.000000e+00> : vector<128xf32>
    %33 = vector.multi_reduction <add>, %32, %cst_27 [0] : vector<2x128xf32> to vector<128xf32>
    %34 = vector.shape_cast %33 : vector<128xf32> to vector<1x128xf32>
    %c1_i32 = arith.constant 1 : i32
    %35 = vector.broadcast %c1_i32 : i32 to vector<4x2x128xi32>
    %36 = arith.cmpi eq, %22, %35 : vector<4x2x128xi32>
    %37 = arith.extui %36 : vector<4x2x128xi1> to vector<4x2x128xi32>
    %38 = arith.sitofp %37 : vector<4x2x128xi32> to vector<4x2x128xf32>
    %cst_28 = arith.constant dense<0.000000e+00> : vector<2x128xf32>
    %39 = vector.multi_reduction <add>, %38, %cst_28 [0] : vector<4x2x128xf32> to vector<2x128xf32>
    %cst_29 = arith.constant dense<0.000000e+00> : vector<128xf32>
    %40 = vector.multi_reduction <add>, %39, %cst_29 [0] : vector<2x128xf32> to vector<128xf32>
    %41 = vector.shape_cast %40 : vector<128xf32> to vector<1x128xf32>
    %42 = vector.extract_strided_slice %13 {offsets = [1, 0, 0], sizes = [1, 2, 128], strides = [1, 1, 1]} : vector<4x2x128xf32> to vector<1x2x128xf32>
    %43 = vector.shape_cast %42 : vector<1x2x128xf32> to vector<2x128xf32>
    %44 = arith.mulf %43, %39 : vector<2x128xf32>
    %cst_30 = arith.constant dense<0.000000e+00> : vector<128xf32>
    %45 = vector.multi_reduction <add>, %44, %cst_30 [0] : vector<2x128xf32> to vector<128xf32>
    %46 = vector.shape_cast %45 : vector<128xf32> to vector<1x128xf32>
    %c2_i32 = arith.constant 2 : i32
    %47 = vector.broadcast %c2_i32 : i32 to vector<4x2x128xi32>
    %48 = arith.cmpi eq, %22, %47 : vector<4x2x128xi32>
    %49 = arith.extui %48 : vector<4x2x128xi1> to vector<4x2x128xi32>
    %50 = arith.sitofp %49 : vector<4x2x128xi32> to vector<4x2x128xf32>
    %cst_31 = arith.constant dense<0.000000e+00> : vector<2x128xf32>
    %51 = vector.multi_reduction <add>, %50, %cst_31 [0] : vector<4x2x128xf32> to vector<2x128xf32>
    %cst_32 = arith.constant dense<0.000000e+00> : vector<128xf32>
    %52 = vector.multi_reduction <add>, %51, %cst_32 [0] : vector<2x128xf32> to vector<128xf32>
    %53 = vector.shape_cast %52 : vector<128xf32> to vector<1x128xf32>
    %54 = vector.extract_strided_slice %13 {offsets = [2, 0, 0], sizes = [1, 2, 128], strides = [1, 1, 1]} : vector<4x2x128xf32> to vector<1x2x128xf32>
    %55 = vector.shape_cast %54 : vector<1x2x128xf32> to vector<2x128xf32>
    %56 = arith.mulf %55, %51 : vector<2x128xf32>
    %cst_33 = arith.constant dense<0.000000e+00> : vector<128xf32>
    %57 = vector.multi_reduction <add>, %56, %cst_33 [0] : vector<2x128xf32> to vector<128xf32>
    %58 = vector.shape_cast %57 : vector<128xf32> to vector<1x128xf32>
    %c3_i32 = arith.constant 3 : i32
    %59 = vector.broadcast %c3_i32 : i32 to vector<4x2x128xi32>
    %60 = arith.cmpi eq, %22, %59 : vector<4x2x128xi32>
    %61 = arith.extui %60 : vector<4x2x128xi1> to vector<4x2x128xi32>
    %62 = arith.sitofp %61 : vector<4x2x128xi32> to vector<4x2x128xf32>
    %cst_34 = arith.constant dense<0.000000e+00> : vector<2x128xf32>
    %63 = vector.multi_reduction <add>, %62, %cst_34 [0] : vector<4x2x128xf32> to vector<2x128xf32>
    %cst_35 = arith.constant dense<0.000000e+00> : vector<128xf32>
    %64 = vector.multi_reduction <add>, %63, %cst_35 [0] : vector<2x128xf32> to vector<128xf32>
    %65 = vector.shape_cast %64 : vector<128xf32> to vector<1x128xf32>
    %66 = vector.extract_strided_slice %13 {offsets = [3, 0, 0], sizes = [1, 2, 128], strides = [1, 1, 1]} : vector<4x2x128xf32> to vector<1x2x128xf32>
    %67 = vector.shape_cast %66 : vector<1x2x128xf32> to vector<2x128xf32>
    %68 = arith.mulf %67, %63 : vector<2x128xf32>
    %cst_36 = arith.constant dense<0.000000e+00> : vector<128xf32>
    %69 = vector.multi_reduction <add>, %68, %cst_36 [0] : vector<2x128xf32> to vector<128xf32>
    %70 = vector.shape_cast %69 : vector<128xf32> to vector<1x128xf32>
    %c0_37 = arith.constant 0 : index
    %c0_38 = arith.constant 0 : index
    %c0_39 = arith.constant 0 : index
    %71 = vector.load %arg6[%c0_37, %c0_38, %c0_39] : memref<1x8x128xf32, #tpu.memory_space<vmem>>, vector<1x8x128xf32>
    %72 = tpu.concatenate %29, %41, %53, %65 in 0 : vector<1x128xf32>, vector<1x128xf32>, vector<1x128xf32>, vector<1x128xf32> -> vector<4x128xf32>
    %cst_40 = arith.constant 0.000000e+00 : f32
    %73 = vector.broadcast %cst_40 : f32 to vector<4x128xf32>
    %74 = tpu.concatenate %72, %73 in 0 : vector<4x128xf32>, vector<4x128xf32> -> vector<8x128xf32>
    %75 = vector.shape_cast %74 : vector<8x128xf32> to vector<1x8x128xf32>
    %76 = arith.addf %71, %75 : vector<1x8x128xf32>
    %c0_41 = arith.constant 0 : index
    %c0_42 = arith.constant 0 : index
    %c0_43 = arith.constant 0 : index
    %77 = vector.load %arg6[%c0_41, %c0_42, %c0_43] : memref<1x8x128xf32, #tpu.memory_space<vmem>>, vector<1x8x128xf32>
    tpu.vector_store %arg6[%c0_41, %c0_42, %c0_43], %76 {strides = array<i32>} : memref<1x8x128xf32, #tpu.memory_space<vmem>>, vector<1x8x128xf32>,
    %c0_44 = arith.constant 0 : index
    %c0_45 = arith.constant 0 : index
    %c0_46 = arith.constant 0 : index
    %78 = vector.load %arg4[%c0_44, %c0_45, %c0_46] : memref<1x8x128xf32, #tpu.memory_space<vmem>>, vector<1x8x128xf32>
    %79 = tpu.concatenate %34, %46, %58, %70 in 0 : vector<1x128xf32>, vector<1x128xf32>, vector<1x128xf32>, vector<1x128xf32> -> vector<4x128xf32>
    %cst_47 = arith.constant 0.000000e+00 : f32
    %80 = vector.broadcast %cst_47 : f32 to vector<4x128xf32>
    %81 = tpu.concatenate %79, %80 in 0 : vector<4x128xf32>, vector<4x128xf32> -> vector<8x128xf32>
    %82 = vector.shape_cast %81 : vector<8x128xf32> to vector<1x8x128xf32>
    %83 = arith.addf %78, %82 : vector<1x8x128xf32>
    %c0_48 = arith.constant 0 : index
    %c0_49 = arith.constant 0 : index
    %c0_50 = arith.constant 0 : index
    %84 = vector.load %arg4[%c0_48, %c0_49, %c0_50] : memref<1x8x128xf32, #tpu.memory_space<vmem>>, vector<1x8x128xf32>
    tpu.vector_store %arg4[%c0_48, %c0_49, %c0_50], %83 {strides = array<i32>} : memref<1x8x128xf32, #tpu.memory_space<vmem>>, vector<1x8x128xf32>,
    return
  }
  func.func @transform_0(%arg0: i32, %arg1: i32) -> (i32, i32, i32, i32) {
    %c1_i32 = arith.constant 1 : i32
    %0 = arith.muli %arg0, %c1_i32 : i32
    %1 = arith.addi %0, %arg1 : i32
    %c0_i32 = arith.constant 0 : i32
    %c0_i32_0 = arith.constant 0 : i32
    %c0_i32_1 = arith.constant 0 : i32
    %c0_i32_2 = arith.constant 0 : i32
    return %c0_i32, %c0_i32_0, %1, %c0_i32_1 : i32, i32, i32, i32
  }
  func.func @transform_1(%arg0: i32, %arg1: i32) -> (i32, i32, i32, i32) {
    %c1_i32 = arith.constant 1 : i32
    %0 = arith.muli %arg0, %c1_i32 : i32
    %1 = arith.addi %0, %arg1 : i32
    %c0_i32 = arith.constant 0 : i32
    %c0_i32_0 = arith.constant 0 : i32
    %c0_i32_1 = arith.constant 0 : i32
    %c0_i32_2 = arith.constant 0 : i32
    return %c0_i32, %c0_i32_0, %1, %c0_i32_1 : i32, i32, i32, i32
  }
  func.func @transform_2(%arg0: i32, %arg1: i32) -> (i32, i32, i32) {
    %c0_i32 = arith.constant 0 : i32
    %c0_i32_0 = arith.constant 0 : i32
    %c0_i32_1 = arith.constant 0 : i32
    return %arg0, %c0_i32, %c0_i32_0 : i32, i32, i32
  }
  func.func @transform_3(%arg0: i32, %arg1: i32) -> (i32, i32, i32) {
    %c0_i32 = arith.constant 0 : i32
    %c0_i32_0 = arith.constant 0 : i32
    %c0_i32_1 = arith.constant 0 : i32
    return %arg0, %c0_i32, %c0_i32_0 : i32, i32, i32
  }
  func.func @transform_4(%arg0: i32, %arg1: i32) -> (i32, i32, i32) {
    %c0_i32 = arith.constant 0 : i32
    %c0_i32_0 = arith.constant 0 : i32
    %c0_i32_1 = arith.constant 0 : i32
    return %arg0, %c0_i32, %c0_i32_0 : i32, i32, i32
  }
}

</mosaic_0001>

<bundles_post_ra>
// kernel: tpu_custom_call.1
= control target key start
LH: loop header
LB: loop body
LE: loop exit
PB: predicated region body
PF: predicated region fallthrough
CT: control target
= control target key end

     0   :  { %10 = vsyncpa [#allocation3], 0  ;;  %s644_s0 = inlined_call_operand.hbm [shape: f32[4,4,2,128], index: 0, kind: input, shape index: {}]   ;;  %s645_s1 = inlined_call_operand.hbm [shape: s32[4,1,2,128], index: 1, kind: input, shape index: {}]   ;;  %s646_s2 = inlined_call_operand.hbm [shape: f32[1,8,128], index: 2, kind: output, shape index: {0}]   ;;  %s647_s3 = inlined_call_operand.hbm [shape: f32[1,8,128], index: 3, kind: output, shape index: {1}]   ;;  %s648_s4 = inlined_call_operand.hbm [shape: f32[1,8,128], index: 4, kind: output, shape index: {2}]  }
   0x1   :  { %11 = vsyncpa [#allocation6], 0 }
   0x2   :  { %12 = vsyncpa [#allocation4], 0 }
   0x3   :  { %13 = vsyncpa [#allocation9], 0  ;;  %s21_s17 = sshll.u32 %s644_s0, 4  ;;  %s496_s18 = smov [#allocation2]   ;;  %s22_s17 = int_to_ptr.hbm [resolvable:$true] %s21_s17 }
   0x4   :  { %s23_s19 = sshll.u32 %s496_s18, 4  ;;  %s37_s22 = sshll.u32 %s645_s1, 4  ;;  %s24_s19 = int_to_ptr.vmem [resolvable:$true] %s23_s19  ;;  %s38_s22 = int_to_ptr.hbm [resolvable:$true] %s37_s22 }
   0x5   :  { %s497_s23 = smov 32   ;;  %s498_s24 = smov 2  }
   0x6   :  { %29 = dma.hbm_to_vmem [thread:$0]  %s22_s17, 512, %s24_s19, [#allocation3], %s497_s23, %s497_s23, %s498_s24  }
   0x7   :  { %s499_s25 = smov [#allocation5]  }
   0x8   :  { %s39_s26 = sshll.u32 %s499_s25, 4  ;;  %s40_s26 = int_to_ptr.vmem [resolvable:$true] %s39_s26 }
   0x9   :  { %45 = dma.hbm_to_vmem [thread:$0]  %s38_s22, 128, %s40_s26, [#allocation6], %s497_s23, %s497_s23, %s498_s24  }
   0xa   :  { %488 = dma.done.wait [#allocation3], 512  }
   0xb   :  { %489 = vsyncadd [#allocation3], 4294966784 }
   0xc   :  { %490 = dma.done.wait [#allocation6], 128  }
   0xd   :  { %491 = vsyncadd [#allocation6], 4294967168  ;;  %vm95_vm0 = vcmask 1041408   ;;  %v63_v0 = vld [vmem:[#allocation2] sm:$0x3]  ;;  %v500_v34 = vmov 0.0  }
   0xe   :  { %v64_v1 = vld [vmem:[#allocation2 + $0x8] sm:$0x3]  ;;  %v65_v2 = vld [vmem:[#allocation2 + $0x10] sm:$0x3]  ;;  %v66_v3 = vld [vmem:[#allocation2 + $0x18] sm:$0x3] }
   0xf   :  { %v68_v4 = vld [vmem:[#allocation2 + $0x2] sm:$0x3]  ;;  %v69_v5 = vld [vmem:[#allocation2 + $0xa] sm:$0x3]  ;;  %v70_v6 = vld [vmem:[#allocation2 + $0x12] sm:$0x3] }
  0x10   :  { %v71_v7 = vld [vmem:[#allocation2 + $0x1a] sm:$0x3]  ;;  %v72_v8 = vadd.f32 %v68_v4, %v63_v0  ;;  %v73_v9 = vadd.f32 %v69_v5, %v64_v1  ;;  %v77_v10 = vld [vmem:[#allocation2 + $0x4] sm:$0x3]  ;;  %v74_v11 = vadd.f32 %v70_v6, %v65_v2  ;;  %v78_v13 = vld [vmem:[#allocation2 + $0xc] sm:$0x3] }
  0x11   :  { %v75_v12 = vadd.f32 %v71_v7, %v66_v3  ;;  %v79_v14 = vld [vmem:[#allocation2 + $0x14] sm:$0x3]  ;;  %v80_v15 = vld [vmem:[#allocation2 + $0x1c] sm:$0x3]  ;;  %v86_v18 = vld [vmem:[#allocation2 + $0x6] sm:$0x3] }
  0x12   :  { %v81_v16 = vadd.f32 %v77_v10, %v72_v8  ;;  %v82_v17 = vadd.f32 %v78_v13, %v73_v9  ;;  %v87_v19 = vld [vmem:[#allocation2 + $0xe] sm:$0x3]  ;;  %v88_v20 = vld [vmem:[#allocation2 + $0x16] sm:$0x3]  ;;  %v83_v21 = vadd.f32 %v79_v14, %v74_v11  ;;  %v89_v23 = vld [vmem:[#allocation2 + $0x1e] sm:$0x3] }
  0x13   :  { %v84_v22 = vadd.f32 %v80_v15, %v75_v12  ;;  %v535_v24 = vld [vmem:[#allocation5] sm:$0x3]  ;;  %v537_v25 = vld [vmem:[#allocation5 + $0x2] sm:$0x3]  ;;  %v543_v28 = vld [vmem:[#allocation5 + $0x4] sm:$0x3] }
  0x14   :  { %v539_v26 = vadd.f32 %v86_v18, %v81_v16  ;;  %v541_v27 = vadd.f32 %v87_v19, %v82_v17  ;;  %v545_v29 = vld [vmem:[#allocation5 + $0x6] sm:$0x3]  ;;  %vm143_vm1 = vcmp.eq.s32.totalorder %v535_v24, 0  ;;  %vm144_vm2 = vcmp.eq.s32.totalorder %v537_v25, 0  ;;  %s501_s0 = smov [#allocation8]   ;;  %s313_s29 = sshll.u32 %s647_s3, 4  ;;  %s314_s29 = int_to_ptr.hbm [resolvable:$true] %s313_s29 }
  0x15   :  { %v549_v30 = vadd.f32 %v88_v20, %v83_v21  ;;  %v551_v31 = vadd.f32 %v89_v23, %v84_v22  ;;  %vm145_vm3 = vcmp.eq.s32.totalorder %v543_v28, 0  ;;  %vm146_vm4 = vcmp.eq.s32.totalorder %v545_v29, 0  ;;  %s311_s1 = sshll.u32 %s501_s0, 4  ;;  %s502_s3 = smov [#allocation10]   ;;  %s312_s1 = int_to_ptr.vmem [resolvable:$true] %s311_s1 }
  0x16   :  { %v96_v32 = vsel %vm95_vm0, %v539_v26, 0.0  ;;  %v103_v33 = vsel %vm95_vm0, %v541_v27, 0.0  ;;  %v344_v35 = vsel %vm143_vm1, 1.0, %v500_v34  ;;  %v345_v36 = vsel %vm144_vm2, 1.0, %v500_v34  ;;  %s322_s30 = sshll.u32 %s502_s3, 4  ;;  %s324_s7 = sshll.u32 %s648_s4, 4  ;;  %s323_s30 = int_to_ptr.vmem [resolvable:$true] %s322_s30  ;;  %s325_s7 = int_to_ptr.hbm [resolvable:$true] %s324_s7 }
  0x17   :  { %v97_v37 = vrot.slane %v96_v32, 4  ;;  %v104_v38 = vrot.slane %v103_v33, 4  ;;  %v110_v39 = vsel %vm95_vm0, %v549_v30, 0.0  ;;  %v117_v40 = vsel %vm95_vm0, %v551_v31, 0.0  ;;  %s503_s8 = smov [#allocation7]   ;;  %s302_s12 = sshll.u32 %s646_s2, 4  ;;  %s303_s12 = int_to_ptr.hbm [resolvable:$true] %s302_s12 }
  0x18   :  { %v111_v41 = vrot.slane %v110_v39, 4  ;;  %v118_v42 = vrot.slane %v117_v40, 4  ;;  %vm128_vm5 = vcmask 1041409   ;;  %v346_v43 = vsel %vm145_vm3, 1.0, %v500_v34  ;;  %s300_s9 = sshll.u32 %s503_s8, 4  ;;  %s301_s9 = int_to_ptr.vmem [resolvable:$true] %s300_s9 }
  0x19   :  { %v347_v44 = vsel %vm146_vm4, 1.0, %v500_v34  ;;  %v98_v45 = vadd.f32 %v97_v37, %v96_v32  ;;  %v105_v46 = vadd.f32 %v104_v38, %v103_v33  ;;  %vm130_vm6 = vcmask 1042434  }
  0x1a   :  { %v155_v47 = vsel %vm95_vm0, %v344_v35, 0.0  ;;  %v156_v48 = vsel %vm95_vm0, %v345_v36, 0.0  ;;  %v112_v49 = vadd.f32 %v111_v41, %v110_v39  ;;  %v119_v50 = vadd.f32 %v118_v42, %v117_v40 }
  0x1b   :  { %vm132_vm7 = vcmask 1043459   ;;  %v157_v51 = vadd.f32 %v156_v48, %v155_v47  ;;  %v158_v52 = vsel %vm95_vm0, %v346_v43, 0.0  ;;  %v99_v53 = vrot.slane %v98_v45, 2 }
  0x1c   :  { %v106_v54 = vrot.slane %v105_v46, 2  ;;  %vm135_vm8 = vcmask 1043456   ;;  %v160_v55 = vsel %vm95_vm0, %v347_v44, 0.0  ;;  %vm177_vm9 = vcmp.eq.s32.totalorder %v535_v24, 1 }
  0x1d   :  { %v113_v56 = vrot.slane %v112_v49, 2  ;;  %v120_v57 = vrot.slane %v119_v50, 2  ;;  %v159_v58 = vadd.f32 %v158_v52, %v157_v51  ;;  %vm178_vm10 = vcmp.eq.s32.totalorder %v537_v25, 1 }
  0x1e   :  { %v100_v59 = vadd.f32 %v99_v53, %v98_v45  ;;  %v107_v60 = vadd.f32 %v106_v54, %v105_v46  ;;  %vm179_vm11 = vcmp.eq.s32.totalorder %v543_v28, 1  ;;  %vm180_vm12 = vcmp.eq.s32.totalorder %v545_v29, 1 }
  0x1f   :  { %v114_v61 = vadd.f32 %v113_v56, %v112_v49  ;;  %v121_v62 = vadd.f32 %v120_v57, %v119_v50  ;;  %v575_v63 = vadd.f32 %v160_v55, %v159_v58  ;;  %v348_v0 = vsel %vm177_vm9, 1.0, %v500_v34 }
  0x20   :  { %v101_v1 = vrot.slane %v100_v59, 1  ;;  %v108_v2 = vrot.slane %v107_v60, 1  ;;  %v349_v3 = vsel %vm178_vm10, 1.0, %v500_v34  ;;  %v350_v4 = vsel %vm179_vm11, 1.0, %v500_v34 }
  0x21   :  { %v115_v5 = vrot.slane %v114_v61, 1  ;;  %v122_v6 = vrot.slane %v121_v62, 1  ;;  %v162_v7 = vsel %vm95_vm0, %v575_v63, 0.0  ;;  %v351_v8 = vsel %vm180_vm12, 1.0, %v500_v34 }
  0x22   :  { %v102_v9 = vadd.f32 %v101_v1, %v100_v59  ;;  %v109_v10 = vadd.f32 %v108_v2, %v107_v60  ;;  %v163_v11 = vrot.slane %v162_v7, 4  ;;  %v189_v12 = vsel %vm95_vm0, %v348_v0, 0.0 }
  0x23   :  { %v116_v13 = vadd.f32 %v115_v5, %v114_v61  ;;  %v123_v14 = vadd.f32 %v122_v6, %v121_v62  ;;  %v190_v15 = vsel %vm95_vm0, %v349_v3, 0.0  ;;  %v192_v16 = vsel %vm95_vm0, %v350_v4, 0.0 }
  0x24   :  { %v129_v17 = vsel %vm128_vm5, %v109_v10, %v102_v9  ;;  %v164_v18 = vadd.f32 %v163_v11, %v162_v7  ;;  %v191_v19 = vadd.f32 %v190_v15, %v189_v12  ;;  %v194_v20 = vsel %vm95_vm0, %v351_v8, 0.0 }
  0x25   :  { %v131_v21 = vsel %vm130_vm6, %v116_v13, %v129_v17  ;;  %vm211_vm13 = vcmp.eq.s32.totalorder %v535_v24, 2  ;;  %vm212_vm14 = vcmp.eq.s32.totalorder %v537_v25, 2  ;;  %vm213_vm15 = vcmp.eq.s32.totalorder %v543_v28, 2 }
  0x26   :  { %v133_v22 = vsel %vm132_vm7, %v123_v14, %v131_v21  ;;  %v193_v23 = vadd.f32 %v192_v16, %v191_v19  ;;  %vm214_vm1 = vcmp.eq.s32.totalorder %v545_v29, 2  ;;  %v352_v33 = vsel %vm211_vm13, 1.0, %v500_v34 }
  0x27   :  { %v136_v32 = vsel %vm135_vm8, %v133_v22, 0.0  ;;  %v353_v35 = vsel %vm212_vm14, 1.0, %v500_v34  ;;  %v354_v36 = vsel %vm213_vm15, 1.0, %v500_v34  ;;  %v355_v38 = vsel %vm214_vm1, 1.0, %v500_v34 }
  0x28   :  { %v195_v37 = vadd.f32 %v194_v20, %v193_v23  ;;  %v165_v39 = vrot.slane %v164_v18, 2  ;;  %v223_v40 = vsel %vm95_vm0, %v352_v33, 0.0  ;;  %v224_v41 = vsel %vm95_vm0, %v353_v35, 0.0  ;;  %138 = vst [vmem:[#allocation8] sm:$0xff] %v136_v32 }
  0x29   :  { %v226_v42 = vsel %vm95_vm0, %v354_v36, 0.0  ;;  %v225_v44 = vadd.f32 %v224_v41, %v223_v40  ;;  %v228_v45 = vsel %vm95_vm0, %v355_v38, 0.0  ;;  %vm245_vm2 = vcmp.eq.s32.totalorder %v535_v24, 3  ;;  %316 = dma.vmem_to_hbm [thread:$0]  %s312_s1, 128, %s314_s29, [#allocation9]  }
  0x2a   :  { %v196_v43 = vsel %vm95_vm0, %v195_v37, 0.0  ;;  %vm246_vm3 = vcmp.eq.s32.totalorder %v537_v25, 3  ;;  %vm247_vm4 = vcmp.eq.s32.totalorder %v543_v28, 3  ;;  %vm248_vm5 = vcmp.eq.s32.totalorder %v545_v29, 3 }
  0x2b   :  { %v197_v46 = vrot.slane %v196_v43, 4  ;;  %v227_v47 = vadd.f32 %v226_v42, %v225_v44  ;;  %v356_v48 = vsel %vm245_vm2, 1.0, %v500_v34  ;;  %v357_v49 = vsel %vm246_vm3, 1.0, %v500_v34 }
  0x2c   :  { %v358_v51 = vsel %vm247_vm4, 1.0, %v500_v34  ;;  %v359_v52 = vsel %vm248_vm5, 1.0, %v500_v34  ;;  %v257_v24 = vsel %vm95_vm0, %v356_v48, 0.0  ;;  %v166_v53 = vadd.f32 %v165_v39, %v164_v18 }
  0x2d   :  { %v198_v50 = vadd.f32 %v197_v46, %v196_v43  ;;  %v229_v54 = vadd.f32 %v228_v45, %v227_v47  ;;  %v258_v25 = vsel %vm95_vm0, %v357_v49, 0.0  ;;  %v260_v28 = vsel %vm95_vm0, %v358_v51, 0.0 }
  0x2e   :  { %v259_v55 = vadd.f32 %v258_v25, %v257_v24  ;;  %v262_v56 = vsel %vm95_vm0, %v359_v52, 0.0  ;;  %v169_v58 = vmul.f32 %v575_v63, %v539_v26  ;;  %v203_v59 = vmul.f32 %v195_v37, %v541_v27 }
  0x2f   :  { %v199_v29 = vrot.slane %v198_v50, 2  ;;  %v230_v57 = vsel %vm95_vm0, %v229_v54, 0.0  ;;  %v237_v34 = vmul.f32 %v229_v54, %v549_v30  ;;  %v167_v0 = vrot.slane %v166_v53, 1 }
  0x30   :  { %v231_v61 = vrot.slane %v230_v57, 4  ;;  %v261_v62 = vadd.f32 %v260_v28, %v259_v55  ;;  %v170_v1 = vsel %vm95_vm0, %v169_v58, 0.0  ;;  %v204_v2 = vsel %vm95_vm0, %v203_v59, 0.0 }
  0x31   :  { %v200_v60 = vadd.f32 %v199_v29, %v198_v50  ;;  %v238_v3 = vsel %vm95_vm0, %v237_v34, 0.0  ;;  %v171_v7 = vrot.slane %v170_v1, 4  ;;  %v205_v8 = vrot.slane %v204_v2, 4 }
  0x32   :  { %v232_v5 = vadd.f32 %v231_v61, %v230_v57  ;;  %v263_v6 = vadd.f32 %v262_v56, %v261_v62  ;;  %v239_v26 = vrot.slane %v238_v3, 4  ;;  %v168_v13 = vadd.f32 %v167_v0, %v166_v53 }
  0x33   :  { %v201_v4 = vrot.slane %v200_v60, 1  ;;  %v172_v30 = vadd.f32 %v171_v7, %v170_v1  ;;  %v206_v10 = vadd.f32 %v205_v8, %v204_v2  ;;  %vm280_vm6 = vcmask 1040384  }
  0x34   :  { %v233_v63 = vrot.slane %v232_v5, 2  ;;  %v264_v27 = vsel %vm95_vm0, %v263_v6, 0.0  ;;  %v240_v11 = vadd.f32 %v239_v26, %v238_v3  ;;  %v271_v12 = vmul.f32 %v263_v6, %v551_v31 }
  0x35   :  { %v265_v9 = vrot.slane %v264_v27, 4  ;;  %v202_v14 = vadd.f32 %v201_v4, %v200_v60  ;;  %v173_v16 = vrot.slane %v172_v30, 2  ;;  %v207_v18 = vrot.slane %v206_v10, 2 }
  0x36   :  { %v234_v15 = vadd.f32 %v233_v63, %v232_v5  ;;  %v241_v19 = vrot.slane %v240_v11, 2  ;;  %v272_v20 = vsel %vm95_vm0, %v271_v12, 0.0  ;;  %vm283_vm7 = vcmask 1042432  }
  0x37   :  { %v266_v17 = vadd.f32 %v265_v9, %v264_v27  ;;  %v174_v22 = vadd.f32 %v173_v16, %v172_v30  ;;  %v273_v23 = vrot.slane %v272_v20, 4  ;;  %v208_v33 = vadd.f32 %v207_v18, %v206_v10 }
  0x38   :  { %v235_v21 = vrot.slane %v234_v15, 1  ;;  %v242_v35 = vadd.f32 %v241_v19, %v240_v11  ;;  %v281_v39 = vsel %vm280_vm6, %v168_v13, %v202_v14 }
  0x39   :  { %v267_v32 = vrot.slane %v266_v17, 2  ;;  %v175_v37 = vrot.slane %v174_v22, 1  ;;  %v274_v38 = vadd.f32 %v273_v23, %v272_v20  ;;  %v209_v40 = vrot.slane %v208_v33, 1 }
  0x3a   :  { %v236_v36 = vadd.f32 %v235_v21, %v234_v15  ;;  %v243_v41 = vrot.slane %v242_v35, 1 }
  0x3b   :  { %v268_v31 = vadd.f32 %v267_v32, %v266_v17  ;;  %v176_v42 = vadd.f32 %v175_v37, %v174_v22  ;;  %v275_v43 = vrot.slane %v274_v38, 2  ;;  %v210_v45 = vadd.f32 %v209_v40, %v208_v33 }
  0x3c   :  { %v244_v46 = vadd.f32 %v243_v41, %v242_v35  ;;  %v282_v47 = vsel %vm95_vm0, %v281_v39, %v236_v36 }
  0x3d   :  { %v269_v44 = vrot.slane %v268_v31, 1  ;;  %v276_v48 = vadd.f32 %v275_v43, %v274_v38  ;;  %v289_v50 = vsel %vm280_vm6, %v176_v42, %v210_v45 }
  0x3e   :  { %v290_v24 = vsel %vm95_vm0, %v289_v50, %v244_v46 }
  0x3f   :  { %v270_v49 = vadd.f32 %v269_v44, %v268_v31  ;;  %v277_v51 = vrot.slane %v276_v48, 1 }
  0x41   :  { %v284_v52 = vsel %vm283_vm7, %v282_v47, %v270_v49  ;;  %v278_v54 = vadd.f32 %v277_v51, %v276_v48 }
  0x42   :  { %v285_v53 = vsel %vm135_vm8, %v284_v52, 0.0 }
  0x43   :  { %v291_v25 = vsel %vm283_vm7, %v290_v24, %v278_v54  ;;  %287 = vst [vmem:[#allocation10] sm:$0xff] %v285_v53 }
  0x44   :  { %v292_v28 = vsel %vm135_vm8, %v291_v25, 0.0  ;;  %327 = dma.vmem_to_hbm [thread:$0]  %s323_s30, 128, %s325_s7, [#allocation9]  }
  0x45   :  { %294 = vst [vmem:[#allocation7] sm:$0xff] %v292_v28 }
  0x46   :  { %305 = dma.vmem_to_hbm [thread:$0]  %s301_s9, 128, %s303_s12, [#allocation4]  }
  0x47   :  { %492 = dma.done.wait [#allocation4], 128  }
  0x48   :  { %493 = vsyncadd [#allocation4], 4294967168 }
  0x49   :  { %494 = dma.done.wait [#allocation9], 256  }
  0x4a   :  { %495 = vsyncadd [#allocation9], 4294967040 }
  0x4b   :  { %340 = vsyncpa [#allocation3], 1 }
  0x4c   :  { %341 = vsyncpa [#allocation6], 1 }
  0x4d   :  { %342 = vsyncpa [#allocation4], 1 }
  0x4e   :  { %343 = vsyncpa [#allocation9], 1 }

</bundles_post_ra>
